<compile_context>
chip_gen: v7x
topology: tpu7x:2x2x1
jax: 0.10.0
libtpu: 0.0.40
codegen_flags: <defaults>
</compile_context>

<pallas_src>
import functools

import jax
import jax.numpy as jnp
from jax.experimental import pallas as pl
from jax.experimental.pallas import tpu as pltpu


def _round_up(n, m):
    return ((n + m - 1) // m) * m


# ---------------------------------------------------------------------------
# Kernels
# ---------------------------------------------------------------------------

def _dblock_kernel_packed(x_ref, w1_ref, b1_ref, w2_ref, b2_ref,
                          wh_ref, bh_ref, mask_ref, out_ref):
    """Head packed in one 128-lane slab: mu in cols [0,o), logsigma in [o,2o)."""
    t = jnp.dot(x_ref[...], w1_ref[...],
                preferred_element_type=jnp.float32) + b1_ref[...]
    t = jnp.maximum(t, 0.0)

    t = jnp.dot(t.astype(w2_ref.dtype), w2_ref[...],
                preferred_element_type=jnp.float32) + b2_ref[...]

    head = jnp.dot(t.astype(wh_ref.dtype), wh_ref[...],
                   preferred_element_type=jnp.float32) + bh_ref[...]

    # relu only the logsigma columns: preloaded (1, 128) f32 mask, one select.
    head = jnp.where(mask_ref[...] != 0.0, jnp.maximum(head, 0.0), head)
    out_ref[...] = head.astype(out_ref.dtype)


def _dblock_kernel_split(o_pad, x_ref, w1_ref, b1_ref, w2_ref, b2_ref,
                         wh_ref, bh_ref, out_ref):
    """Head is [mu_pad | ls_pad], each o_pad (128-multiple) lanes wide."""
    t = jnp.dot(x_ref[...], w1_ref[...],
                preferred_element_type=jnp.float32) + b1_ref[...]
    t = jnp.maximum(t, 0.0)

    t = jnp.dot(t.astype(w2_ref.dtype), w2_ref[...],
                preferred_element_type=jnp.float32) + b2_ref[...]

    head = jnp.dot(t.astype(wh_ref.dtype), wh_ref[...],
                   preferred_element_type=jnp.float32) + bh_ref[...]

    # static slices at 128-lane boundaries: no iota / select, no tile crossing.
    out_ref[:, :o_pad] = head[:, :o_pad].astype(out_ref.dtype)
    out_ref[:, o_pad:] = jnp.maximum(head[:, o_pad:], 0.0).astype(out_ref.dtype)


# ---------------------------------------------------------------------------
# One-time parameter preparation (hoisted out of the hot path)
# ---------------------------------------------------------------------------

def prepare_params(params, *, compute_dtype=jnp.bfloat16):
    """Pad / cast / fuse weights once. Zero padding is numerically exact."""
    cdt = jnp.dtype(compute_dtype)
    in_size, h = params["w1"].shape
    o = params["wmu"].shape[1]

    in_pad = _round_up(in_size, 128)
    h_pad = _round_up(h, 128)
    packed = (2 * o) <= 128

    def pad_w(w, rows, cols):
        return jnp.pad(w, ((0, rows - w.shape[0]),
                           (0, cols - w.shape[1]))).astype(cdt)

    def pad_b(b, cols):
        b2d = jnp.asarray(b).reshape(1, -1)
        return jnp.pad(b2d, ((0, 0), (0, cols - b2d.shape[1]))).astype(jnp.float32)

    prep = dict(
        w1=pad_w(params["w1"], in_pad, h_pad),
        b1=pad_b(params["b1"], h_pad),
        w2=pad_w(params["w2"], h_pad, h_pad),
        b2=pad_b(params["b2"], h_pad),
    )

    if packed:
        head_w = 128
        wh = jnp.zeros((h_pad, head_w), cdt)
        wh = wh.at[:h, :o].set(params["wmu"].astype(cdt))
        wh = wh.at[:h, o:2 * o].set(params["wls"].astype(cdt))
        bh = jnp.zeros((1, head_w), jnp.float32)
        bh = bh.at[0, :o].set(params["bmu"].reshape(-1).astype(jnp.float32))
        bh = bh.at[0, o:2 * o].set(params["bls"].reshape(-1).astype(jnp.float32))
        cols = jnp.arange(head_w)[None, :]
        mask = ((cols >= o) & (cols < 2 * o)).astype(jnp.float32)
        prep.update(wh=wh, bh=bh, head_mask=mask)
    else:
        o_pad = _round_up(o, 128)
        wh = jnp.concatenate([pad_w(params["wmu"], h_pad, o_pad),
                              pad_w(params["wls"], h_pad, o_pad)], axis=1)
        bh = jnp.concatenate([pad_b(params["bmu"], o_pad),
                              pad_b(params["bls"], o_pad)], axis=1)
        prep.update(wh=wh, bh=bh)
    return prep


# ---------------------------------------------------------------------------
# Forward
# ---------------------------------------------------------------------------

@functools.partial(jax.jit, static_argnames=("output_size", "block_b"))
def dblock_forward(x, prep, *, output_size, block_b=512):
    """Pallas DBlock_Relu_Mini forward on prepared params.

    x: (B, input_size); prep: output of prepare_params().
    Returns (mu, logsigma), each (B, output_size), dtype of x.
    """
    B, in_size = x.shape
    cdt = prep["w1"].dtype
    in_pad, h_pad = prep["w1"].shape
    head_w = prep["wh"].shape[1]
    o = output_size
    packed = (2 * o) <= 128

    # Batch tiling: ensure >=2 grid steps whenever B > 8 (keeps both v7x
    # TensorCores busy); keep tiles at >=8 sublanes and cap at block_b.
    if B > 8:
        block_b = min(block_b, _round_up((B + 1) // 2, 8))
    block_b = max(8, min(block_b, _round_up(B, 8)))
    b_pad = _round_up(B, block_b)
    grid = (b_pad // block_b,)

    xp = jnp.pad(x, ((0, b_pad - B), (0, in_pad - in_size))).astype(cdt)

    itemsize = jnp.dtype(cdt).itemsize
    flops = 2 * b_pad * (in_pad * h_pad + h_pad * h_pad + h_pad * head_w)
    bytes_accessed = int(
        xp.size * itemsize
        + (prep["w1"].size + prep["w2"].size + prep["wh"].size) * itemsize
        + (prep["b1"].size + prep["b2"].size + prep["bh"].size) * 4
        + b_pad * head_w * 4)

    # VMEM budget: resident weights (worst-case double-buffered) + x/out tiles.
    vmem_need = int(
        2 * (prep["w1"].size + prep["w2"].size + prep["wh"].size) * itemsize
        + 2 * (prep["b1"].size + prep["b2"].size + prep["bh"].size + head_w) * 4
        + 2 * block_b * in_pad * itemsize
        + 2 * block_b * head_w * 4)
    vmem_limit = min(max(vmem_need + (4 << 20), 32 << 20), 64 << 20)
    # TODO(synk): if hidden_size grows so resident W2/Wh exceed v7x's 64 MiB
    # VMEM, add a K-tiling (reduction) grid axis with an f32 VMEM accumulator.

    in_specs = [
        pl.BlockSpec((block_b, in_pad), lambda i: (i, 0)),    # x tile (streams)
        pl.BlockSpec((in_pad, h_pad), lambda i: (0, 0)),      # W1 (resident)
        pl.BlockSpec((1, h_pad), lambda i: (0, 0)),           # b1
        pl.BlockSpec((h_pad, h_pad), lambda i: (0, 0)),       # W2 (resident)
        pl.BlockSpec((1, h_pad), lambda i: (0, 0)),           # b2
        pl.BlockSpec((h_pad, head_w), lambda i: (0, 0)),      # [Wmu|Wls]
        pl.BlockSpec((1, head_w), lambda i: (0, 0)),          # [bmu|bls]
    ]
    args = [xp, prep["w1"], prep["b1"], prep["w2"], prep["b2"],
            prep["wh"], prep["bh"]]
    if packed:
        in_specs.append(pl.BlockSpec((1, head_w), lambda i: (0, 0)))  # ls mask
        args.append(prep["head_mask"])
        kernel = _dblock_kernel_packed
    else:
        kernel = functools.partial(_dblock_kernel_split, head_w // 2)

    out = pl.pallas_call(
        kernel,
        out_shape=jax.ShapeDtypeStruct((b_pad, head_w), jnp.float32),
        grid_spec=pltpu.PrefetchScalarGridSpec(
            num_scalar_prefetch=0,
            grid=grid,
            in_specs=in_specs,
            out_specs=pl.BlockSpec((block_b, head_w), lambda i: (i, 0))),
        compiler_params=pltpu.CompilerParams(
            dimension_semantics=("parallel",),
            vmem_limit_bytes=vmem_limit),
        cost_estimate=pl.CostEstimate(
            flops=flops, transcendentals=0, bytes_accessed=bytes_accessed),
    )(*args)

    if packed:
        mu = out[:B, :o]
        logsigma = out[:B, o:2 * o]
    else:
        o_pad = head_w // 2
        mu = out[:B, :o]
        logsigma = out[:B, o_pad:o_pad + o]
    return mu.astype(x.dtype), logsigma.astype(x.dtype)


def dblock_relu_mini(x, params, *, compute_dtype=jnp.bfloat16, block_b=512):
    """Convenience one-shot wrapper (prepares params every call; prefer
    prepare_params() + dblock_forward() in a real inference loop)."""
    prep = prepare_params(params, compute_dtype=compute_dtype)
    return dblock_forward(x, prep, output_size=params["wmu"].shape[1],
                          block_b=block_b)


# ---------------------------------------------------------------------------
# Reference + init
# ---------------------------------------------------------------------------

def init_params(key, input_size, hidden_size, output_size):
    """Deterministic init mimicking nn.Linear's U(-1/sqrt(fan_in), 1/sqrt(fan_in))."""
    def linear(k, fan_in, fan_out):
        kw, kb = jax.random.split(k)
        bound = 1.0 / jnp.sqrt(fan_in)
        w = jax.random.uniform(kw, (fan_in, fan_out), jnp.float32, -bound, bound)
        b = jax.random.uniform(kb, (1, fan_out), jnp.float32, -bound, bound)
        return w, b

    k1, k2, k3, k4 = jax.random.split(key, 4)
    w1, b1 = linear(k1, input_size, hidden_size)
    w2, b2 = linear(k2, hidden_size, hidden_size)
    wmu, bmu = linear(k3, hidden_size, output_size)
    wls, bls = linear(k4, hidden_size, output_size)
    return dict(w1=w1, b1=b1, w2=w2, b2=b2,
                wmu=wmu, bmu=bmu, wls=wls, bls=bls)


def reference_forward(x, p):
    t = jax.nn.relu(x @ p["w1"] + p["b1"])
    t = t @ p["w2"] + p["b2"]
    mu = t @ p["wmu"] + p["bmu"]
    logsigma = jax.nn.relu(t @ p["wls"] + p["bls"])
    return mu, logsigma


if __name__ == "__main__":
    key = jax.random.PRNGKey(0)
    kx, kp = jax.random.split(key)

    batch, input_size, hidden_size, output_size = 8, 32, 32, 16
    x = jax.random.normal(kx, (batch, input_size), jnp.float32)
    params = init_params(kp, input_size, hidden_size, output_size)
    mu_ref, ls_ref = reference_forward(x, params)

    # f32 compute path (strict check); params prepared once, reused below.
    prep_f32 = prepare_params(params, compute_dtype=jnp.float32)
    mu, logsigma = dblock_forward(x, prep_f32, output_size=output_size)
    jax.block_until_ready((mu, logsigma))
    assert mu.shape == (batch, output_size)
    assert logsigma.shape == (batch, output_size)
    assert jnp.allclose(mu, mu_ref, atol=1e-4, rtol=1e-4)
    assert jnp.allclose(logsigma, ls_ref, atol=1e-4, rtol=1e-4)
    assert jnp.all(logsigma >= 0.0)

    # batch not a multiple of 8 (exercises batch padding path)
    x2 = jax.random.normal(jax.random.PRNGKey(2), (5, input_size), jnp.float32)
    mu2, ls2 = dblock_forward(x2, prep_f32, output_size=output_size)
    jax.block_until_ready((mu2, ls2))
    mu2_ref, ls2_ref = reference_forward(x2, params)
    assert jnp.allclose(mu2, mu2_ref, atol=1e-4, rtol=1e-4)
    assert jnp.allclose(ls2, ls2_ref, atol=1e-4, rtol=1e-4)

    # larger batch: exercises the >=2 grid-steps path (v7x 2-TC sharding)
    x3 = jax.random.normal(jax.random.PRNGKey(3), (100, input_size), jnp.float32)
    mu3, ls3 = dblock_forward(x3, prep_f32, output_size=output_size)
    jax.block_until_ready((mu3, ls3))
    mu3_ref, ls3_ref = reference_forward(x3, params)
    assert jnp.allclose(mu3, mu3_ref, atol=1e-4, rtol=1e-4)
    assert jnp.allclose(ls3, ls3_ref, atol=1e-4, rtol=1e-4)

    # bf16 default compute path (MXU fast path on v6e/v7x), looser tolerance
    prep_bf16 = prepare_params(params)  # compute_dtype defaults to bfloat16
    mu_bf, ls_bf = dblock_forward(x, prep_bf16, output_size=output_size)
    jax.block_until_ready((mu_bf, ls_bf))
    assert jnp.allclose(mu_bf, mu_ref, atol=1e-1, rtol=1e-1)
    assert jnp.allclose(ls_bf, ls_ref, atol=1e-1, rtol=1e-1)
    assert jnp.all(ls_bf >= 0.0)

    print("KERNEL_OK")
</pallas_src>

<mosaic_0001>
module attributes {stable_mosaic.version = 11 : i64} {
  func.func @_dblock_kernel_packed(%arg0: i32, %arg1: memref<8x128xf32, #tpu.memory_space<vmem>>, %arg2: memref<128x128xf32, #tpu.memory_space<vmem>>, %arg3: memref<1x128xf32, #tpu.memory_space<vmem>>, %arg4: memref<128x128xf32, #tpu.memory_space<vmem>>, %arg5: memref<1x128xf32, #tpu.memory_space<vmem>>, %arg6: memref<128x128xf32, #tpu.memory_space<vmem>>, %arg7: memref<1x128xf32, #tpu.memory_space<vmem>>, %arg8: memref<1x128xf32, #tpu.memory_space<vmem>>, %arg9: memref<8x128xf32, #tpu.memory_space<vmem>>) attributes {dimension_semantics = [#tpu.dimension_semantics<parallel>], iteration_bounds = array<i64: 1>, scalar_prefetch = 0 : i64, scratch_operands = 0 : i64, tpu.core_type = #tpu.core_type<tc>, window_params = [{transform_indices = @transform_0, window_bounds = array<i64: 8, 128>}, {pipeline_mode = #tpu.pipeline_mode<synchronous>, transform_indices = @transform_1, window_bounds = array<i64: 128, 128>}, {pipeline_mode = #tpu.pipeline_mode<synchronous>, transform_indices = @transform_2, window_bounds = array<i64: 1, 128>}, {pipeline_mode = #tpu.pipeline_mode<synchronous>, transform_indices = @transform_3, window_bounds = array<i64: 128, 128>}, {pipeline_mode = #tpu.pipeline_mode<synchronous>, transform_indices = @transform_4, window_bounds = array<i64: 1, 128>}, {pipeline_mode = #tpu.pipeline_mode<synchronous>, transform_indices = @transform_5, window_bounds = array<i64: 128, 128>}, {pipeline_mode = #tpu.pipeline_mode<synchronous>, transform_indices = @transform_6, window_bounds = array<i64: 1, 128>}, {pipeline_mode = #tpu.pipeline_mode<synchronous>, transform_indices = @transform_7, window_bounds = array<i64: 1, 128>}, {transform_indices = @transform_8, window_bounds = array<i64: 8, 128>}]} {
    %c0 = arith.constant 0 : index
    %c0_0 = arith.constant 0 : index
    %0 = vector.load %arg1[%c0, %c0_0] : memref<8x128xf32, #tpu.memory_space<vmem>>, vector<8x128xf32>
    %c0_1 = arith.constant 0 : index
    %c0_2 = arith.constant 0 : index
    %1 = vector.load %arg2[%c0_1, %c0_2] : memref<128x128xf32, #tpu.memory_space<vmem>>, vector<128x128xf32>
    %cst = arith.constant dense<0.000000e+00> : vector<8x128xf32>
    %2 = tpu.matmul %0, %1, %cst {dimension_numbers = #tpu.dot_dimension_numbers<[1], [0], [0], [1], [0, 0, 1, 1], [], []>} : vector<8x128xf32>, vector<128x128xf32>, vector<8x128xf32> -> vector<8x128xf32>
    %c0_3 = arith.constant 0 : index
    %c0_4 = arith.constant 0 : index
    %3 = vector.load %arg3[%c0_3, %c0_4] : memref<1x128xf32, #tpu.memory_space<vmem>>, vector<1x128xf32>
    %4 = vector.broadcast %3 : vector<1x128xf32> to vector<8x128xf32>
    %5 = arith.addf %2, %4 : vector<8x128xf32>
    %cst_5 = arith.constant 0.000000e+00 : f32
    %6 = vector.broadcast %cst_5 : f32 to vector<8x128xf32>
    %7 = arith.maximumf %5, %6 : vector<8x128xf32>
    %c0_6 = arith.constant 0 : index
    %c0_7 = arith.constant 0 : index
    %8 = vector.load %arg4[%c0_6, %c0_7] : memref<128x128xf32, #tpu.memory_space<vmem>>, vector<128x128xf32>
    %cst_8 = arith.constant dense<0.000000e+00> : vector<8x128xf32>
    %9 = tpu.matmul %7, %8, %cst_8 {dimension_numbers = #tpu.dot_dimension_numbers<[1], [0], [0], [1], [0, 0, 1, 1], [], []>} : vector<8x128xf32>, vector<128x128xf32>, vector<8x128xf32> -> vector<8x128xf32>
    %c0_9 = arith.constant 0 : index
    %c0_10 = arith.constant 0 : index
    %10 = vector.load %arg5[%c0_9, %c0_10] : memref<1x128xf32, #tpu.memory_space<vmem>>, vector<1x128xf32>
    %11 = vector.broadcast %10 : vector<1x128xf32> to vector<8x128xf32>
    %12 = arith.addf %9, %11 : vector<8x128xf32>
    %c0_11 = arith.constant 0 : index
    %c0_12 = arith.constant 0 : index
    %13 = vector.load %arg6[%c0_11, %c0_12] : memref<128x128xf32, #tpu.memory_space<vmem>>, vector<128x128xf32>
    %cst_13 = arith.constant dense<0.000000e+00> : vector<8x128xf32>
    %14 = tpu.matmul %12, %13, %cst_13 {dimension_numbers = #tpu.dot_dimension_numbers<[1], [0], [0], [1], [0, 0, 1, 1], [], []>} : vector<8x128xf32>, vector<128x128xf32>, vector<8x128xf32> -> vector<8x128xf32>
    %c0_14 = arith.constant 0 : index
    %c0_15 = arith.constant 0 : index
    %15 = vector.load %arg7[%c0_14, %c0_15] : memref<1x128xf32, #tpu.memory_space<vmem>>, vector<1x128xf32>
    %16 = vector.broadcast %15 : vector<1x128xf32> to vector<8x128xf32>
    %17 = arith.addf %14, %16 : vector<8x128xf32>
    %c0_16 = arith.constant 0 : index
    %c0_17 = arith.constant 0 : index
    %18 = vector.load %arg8[%c0_16, %c0_17] : memref<1x128xf32, #tpu.memory_space<vmem>>, vector<1x128xf32>
    %cst_18 = arith.constant 0.000000e+00 : f32
    %19 = vector.broadcast %cst_18 : f32 to vector<1x128xf32>
    %20 = arith.cmpf one, %18, %19 : vector<1x128xf32>
    %cst_19 = arith.constant 0.000000e+00 : f32
    %21 = vector.broadcast %cst_19 : f32 to vector<8x128xf32>
    %22 = arith.maximumf %17, %21 : vector<8x128xf32>
    %23 = vector.shape_cast %20 : vector<1x128xi1> to vector<1x128xi1>
    %24 = vector.broadcast %23 : vector<1x128xi1> to vector<8x128xi1>
    %25 = arith.select %24, %22, %17 : vector<8x128xi1>, vector<8x128xf32>
    %c0_20 = arith.constant 0 : index
    %c0_21 = arith.constant 0 : index
    %26 = vector.load %arg9[%c0_20, %c0_21] : memref<8x128xf32, #tpu.memory_space<vmem>>, vector<8x128xf32>
    tpu.vector_store %arg9[%c0_20, %c0_21], %25 {strides = array<i32>} : memref<8x128xf32, #tpu.memory_space<vmem>>, vector<8x128xf32>,
    return
  }
  func.func @transform_0(%arg0: i32) -> (i32, i32) {
    %c0_i32 = arith.constant 0 : i32
    %c0_i32_0 = arith.constant 0 : i32
    return %arg0, %c0_i32 : i32, i32
  }
  func.func @transform_1(%arg0: i32) -> (i32, i32) {
    %c0_i32 = arith.constant 0 : i32
    %c0_i32_0 = arith.constant 0 : i32
    %c0_i32_1 = arith.constant 0 : i32
    return %c0_i32, %c0_i32_0 : i32, i32
  }
  func.func @transform_2(%arg0: i32) -> (i32, i32) {
    %c0_i32 = arith.constant 0 : i32
    %c0_i32_0 = arith.constant 0 : i32
    %c0_i32_1 = arith.constant 0 : i32
    return %c0_i32, %c0_i32_0 : i32, i32
  }
  func.func @transform_3(%arg0: i32) -> (i32, i32) {
    %c0_i32 = arith.constant 0 : i32
    %c0_i32_0 = arith.constant 0 : i32
    %c0_i32_1 = arith.constant 0 : i32
    return %c0_i32, %c0_i32_0 : i32, i32
  }
  func.func @transform_4(%arg0: i32) -> (i32, i32) {
    %c0_i32 = arith.constant 0 : i32
    %c0_i32_0 = arith.constant 0 : i32
    %c0_i32_1 = arith.constant 0 : i32
    return %c0_i32, %c0_i32_0 : i32, i32
  }
  func.func @transform_5(%arg0: i32) -> (i32, i32) {
    %c0_i32 = arith.constant 0 : i32
    %c0_i32_0 = arith.constant 0 : i32
    %c0_i32_1 = arith.constant 0 : i32
    return %c0_i32, %c0_i32_0 : i32, i32
  }
  func.func @transform_6(%arg0: i32) -> (i32, i32) {
    %c0_i32 = arith.constant 0 : i32
    %c0_i32_0 = arith.constant 0 : i32
    %c0_i32_1 = arith.constant 0 : i32
    return %c0_i32, %c0_i32_0 : i32, i32
  }
  func.func @transform_7(%arg0: i32) -> (i32, i32) {
    %c0_i32 = arith.constant 0 : i32
    %c0_i32_0 = arith.constant 0 : i32
    %c0_i32_1 = arith.constant 0 : i32
    return %c0_i32, %c0_i32_0 : i32, i32
  }
  func.func @transform_8(%arg0: i32) -> (i32, i32) {
    %c0_i32 = arith.constant 0 : i32
    %c0_i32_0 = arith.constant 0 : i32
    return %arg0, %c0_i32 : i32, i32
  }
}

</mosaic_0001>

<bundles_post_ra>
// kernel: dblock_forward.1
= control target key start
LH: loop header
LB: loop body
LE: loop exit
PB: predicated region body
PF: predicated region fallthrough
CT: control target
= control target key end

     0   :  { %13 = vsyncpa [#allocation3], 0  ;;  %s832_s0 = inlined_call_operand.vmem [shape: f32[8,128], index: 0, kind: input, shape index: {}]   ;;  %s833_s1 = inlined_call_operand.hbm [shape: f32[128,128], index: 1, kind: input, shape index: {}]   ;;  %s834_s2 = inlined_call_operand.vmem [shape: f32[1,128], index: 2, kind: input, shape index: {}]   ;;  %s835_s3 = inlined_call_operand.hbm [shape: f32[128,128], index: 3, kind: input, shape index: {}]   ;;  %s836_s4 = inlined_call_operand.vmem [shape: f32[1,128], index: 4, kind: input, shape index: {}]   ;;  %s837_s5 = inlined_call_operand.hbm [shape: f32[128,128], index: 5, kind: input, shape index: {}]   ;;  %s838_s6 = inlined_call_operand.vmem [shape: f32[1,128], index: 6, kind: input, shape index: {}]   ;;  %s839_s7 = inlined_call_operand.vmem [shape: f32[1,128], index: 7, kind: input, shape index: {}]   ;;  %s840_s8 = inlined_call_operand.vmem [shape: f32[8,128], index: 8, kind: output, shape index: {}]  }
   0x1   :  { %14 = vsyncpa [#allocation5], 0  ;;  %s678_s27 = smov [#allocation4]   ;;  %s679_s29 = smov [#allocation2]  }
   0x2   :  { %s36_s28 = sshll.u32 %s678_s27, 4  ;;  %s22_s30 = sshll.u32 %s679_s29, 4  ;;  %s37_s28 = int_to_ptr.vmem [resolvable:$true] %s36_s28  ;;  %s732_s30 = int_to_ptr.vmem [resolvable:$true] %s22_s30 }
   0x3   :  { %s608_s11 = scalar_lea.hbm %s835_s3, 2048 }
   0x4   :  { %p609_p0 = scmp.ne.s32.totalorder %s835_s3, %s608_s11  ;;  %p612_p1 = scmp.lt.u32.totalorder %s608_s11, %s835_s3 }
   0x6   :  { %p614_p2 = pnand %p612_p1, %p609_p0 }
   0x8   :  { %617 = shalt.err (!%p614_p2)
}
   0x9   :  { %s618_s16 = scalar_lea.vmem %s37_s28, 2048  ;;  %p623_p4 = scmp.lt.s32.totalorder %s37_s28, %s37_s28 }
   0xa   :  { %p619_p3 = scmp.ne.s32.totalorder %s37_s28, %s618_s16  ;;  %p624_p5 = scmp.lt.s32.totalorder %s618_s16, %s618_s16 }
   0xc   :  { %p625_p6 = por %p624_p5, %p623_p4 }
   0xe   :  { %p626_p7 = pnand %p625_p6, %p619_p3 }
  0x10   :  { %629 = shalt.err (!%p626_p7)
}
  0x11   :  { %s680_s17 = smov 128   ;;  %s681_s18 = smov 8  }
  0x12   :  { %42 = dma.hbm_to_vmem [thread:$0]  %s835_s3, 2048, %s37_s28, [#allocation5], %s680_s17, %s680_s17, %s681_s18  }
  0x13   :  { %s630_s23 = scalar_lea.hbm %s833_s1, 2048 }
  0x14   :  { %p631_p8 = scmp.ne.s32.totalorder %s833_s1, %s630_s23  ;;  %p634_p9 = scmp.lt.u32.totalorder %s630_s23, %s833_s1 }
  0x16   :  { %p636_p10 = pnand %p634_p9, %p631_p8 }
  0x18   :  { %639 = shalt.err (!%p636_p10)
}
  0x19   :  { %s640_s29 = scalar_lea.vmem %s732_s30, 2048  ;;  %p645_p12 = scmp.lt.s32.totalorder %s732_s30, %s732_s30 }
  0x1a   :  { %p641_p11 = scmp.ne.s32.totalorder %s732_s30, %s640_s29  ;;  %p646_p13 = scmp.lt.s32.totalorder %s640_s29, %s640_s29 }
  0x1c   :  { %p647_p0 = por %p646_p13, %p645_p12 }
  0x1e   :  { %p648_p1 = pnand %p647_p0, %p641_p11 }
  0x20   :  { %651 = shalt.err (!%p648_p1)
}
  0x21   :  { %28 = dma.hbm_to_vmem [thread:$0]  %s833_s1, 2048, %s732_s30, [#allocation3], %s680_s17, %s680_s17, %s681_s18  }
  0x22   :  { %s682_s9 = smov [#allocation6]   ;;  %s652_s13 = scalar_lea.hbm %s837_s5, 2048 }
  0x23   :  { %s50_s10 = sshll.u32 %s682_s9, 4  ;;  %p653_p2 = scmp.ne.s32.totalorder %s837_s5, %s652_s13  ;;  %s51_s10 = int_to_ptr.vmem [resolvable:$true] %s50_s10 }
  0x24   :  { %p656_p3 = scmp.lt.u32.totalorder %s652_s13, %s837_s5 }
  0x26   :  { %p658_p4 = pnand %p656_p3, %p653_p2 }
  0x28   :  { %661 = shalt.err (!%p658_p4)
}
  0x29   :  { %s662_s20 = scalar_lea.vmem %s51_s10, 2048  ;;  %p667_p6 = scmp.lt.s32.totalorder %s51_s10, %s51_s10 }
  0x2a   :  { %p663_p5 = scmp.ne.s32.totalorder %s51_s10, %s662_s20  ;;  %p668_p7 = scmp.lt.s32.totalorder %s662_s20, %s662_s20 }
  0x2c   :  { %p669_p8 = por %p668_p7, %p667_p6 }
  0x2e   :  { %p670_p9 = pnand %p669_p8, %p663_p5 }
  0x30   :  { %673 = shalt.err (!%p670_p9)
}
  0x31   :  { %56 = dma.hbm_to_vmem [thread:$0]  %s837_s5, 2048, %s51_s10, [#allocation5], %s680_s17, %s680_s17, %s681_s18  }
  0x32   :  { %674 = dma.done.wait [#allocation3], 2048  }
  0x33   :  { %675 = vsyncadd [#allocation3], 4294965248 }
  0x34   :  { %676 = dma.done.wait [#allocation5], 4096  }
  0x35   :  { %677 = vsyncadd [#allocation5], 4294963200  ;;  %v683_v0 = vmov 0.0|0.0   ;;  %vm684_vm0 = vmmov 0   ;;  %v685_v1 = vmov 0.0   ;;  %v71_v2 = vld [vmem:[#allocation2] sm:$0xff] }
  0x36   :  { %527 = vmatprep.subr.bf16.mxu0 %v683_v0  ;;  %454 = vmatprep.mubr.msk.f32.mxu0 %vm684_vm0, %v685_v1  ;;  %v72_v3 = vld [vmem:[#allocation2 + $0x8] sm:$0xff]  ;;  %v73_v4 = vld [vmem:[#allocation2 + $0x10] sm:$0xff]  ;;  %v74_v6 = vld [vmem:[#allocation2 + $0x18] sm:$0xff] }
  0x37   :  { %551 = vmatprep.subr.bf16.mxu1 %v683_v0  ;;  %489 = vmatprep.mubr.msk.f32.mxu1 %vm684_vm0, %v685_v1  ;;  %v528_v5 = vpack.c.bf16 %v72_v3, %v71_v2  ;;  %v531_v7 = vpack.c.bf16 %v74_v6, %v73_v4  ;;  %v75_v8 = vld [vmem:[#allocation2 + $0x20] sm:$0xff]  ;;  %v76_v9 = vld [vmem:[#allocation2 + $0x28] sm:$0xff]  ;;  %v167_v12 = vld [vmem:[#allocation4 + $0x10] sm:$0xff] }
  0x38   :  { %v165_v10 = vld [vmem:[#allocation4] sm:$0xff]  ;;  %v166_v11 = vld [vmem:[#allocation4 + $0x8] sm:$0xff]  ;;  %v168_v13 = vld [vmem:[#allocation4 + $0x18] sm:$0xff]  ;;  %v534_v14 = vpack.c.bf16 %v76_v9, %v75_v8 }
  0x39   :  { %529 = vmatpush3.bf16.msra.mxu0 %v528_v5  ;;  %v552_v15 = vpack.c.bf16 %v166_v11, %v165_v10  ;;  %v77_v16 = vld [vmem:[#allocation2 + $0x30] sm:$0xff]  ;;  %v78_v17 = vld [vmem:[#allocation2 + $0x38] sm:$0xff]  ;;  %v555_v18 = vpack.c.bf16 %v168_v13, %v167_v12  ;;  %v169_v19 = vld [vmem:[#allocation4 + $0x20] sm:$0xff] }
  0x3a   :  { %530 = vmatprep.subr.bf16.mxu0 %v683_v0  ;;  %v170_v20 = vld [vmem:[#allocation4 + $0x28] sm:$0xff]  ;;  %v537_v21 = vpack.c.bf16 %v78_v17, %v77_v16  ;;  %v79_v22 = vld [vmem:[#allocation2 + $0x40] sm:$0xff]  ;;  %v171_v25 = vld [vmem:[#allocation4 + $0x30] sm:$0xff] }
  0x3b   :  { %553 = vmatpush3.bf16.msra.mxu1 %v552_v15  ;;  %v80_v23 = vld [vmem:[#allocation2 + $0x48] sm:$0xff]  ;;  %v558_v24 = vpack.c.bf16 %v170_v20, %v169_v19  ;;  %v172_v26 = vld [vmem:[#allocation4 + $0x38] sm:$0xff]  ;;  %v81_v28 = vld [vmem:[#allocation2 + $0x50] sm:$0xff]  ;;  %v355_v20 = vlaneseq }
  0x3c   :  { %554 = vmatprep.subr.bf16.mxu1 %v683_v0  ;;  %v540_v27 = vpack.c.bf16 %v80_v23, %v79_v22  ;;  %v82_v29 = vld [vmem:[#allocation2 + $0x58] sm:$0xff]  ;;  %v561_v30 = vpack.c.bf16 %v172_v26, %v171_v25  ;;  %v173_v31 = vld [vmem:[#allocation4 + $0x40] sm:$0xff]  ;;  %v174_v32 = vld [vmem:[#allocation4 + $0x48] sm:$0xff] }
  0x3d   :  { %532 = vmatpush3.bf16.msra.mxu0 %v531_v7  ;;  %v543_v33 = vpack.c.bf16 %v82_v29, %v81_v28  ;;  %v83_v34 = vld [vmem:[#allocation2 + $0x60] sm:$0xff]  ;;  %v84_v35 = vld [vmem:[#allocation2 + $0x68] sm:$0xff]  ;;  %v564_v36 = vpack.c.bf16 %v174_v32, %v173_v31  ;;  %v175_v37 = vld [vmem:[#allocation4 + $0x50] sm:$0xff]  ;;  %v356_v22 = vshrl.u32 %v355_v20, 7 }
  0x3e   :  { %533 = vmatprep.subr.bf16.mxu0 %v683_v0  ;;  %v176_v38 = vld [vmem:[#allocation4 + $0x58] sm:$0xff]  ;;  %v546_v39 = vpack.c.bf16 %v84_v35, %v83_v34  ;;  %v85_v40 = vld [vmem:[#allocation2 + $0x70] sm:$0xff]  ;;  %v177_v43 = vld [vmem:[#allocation4 + $0x60] sm:$0xff] }
  0x3f   :  { %556 = vmatpush3.bf16.msra.mxu1 %v555_v18  ;;  %v86_v41 = vld [vmem:[#allocation2 + $0x78] sm:$0xff]  ;;  %v567_v42 = vpack.c.bf16 %v176_v38, %v175_v37  ;;  %v178_v44 = vld [vmem:[#allocation4 + $0x68] sm:$0xff]  ;;  %v70_v47 = vld [vmem:[%s832_s0] sm:$0xff]  ;;  %v357_v23 = vsub.s32 0, %v356_v22 }
  0x40   :  { %557 = vmatprep.subr.bf16.mxu1 %v683_v0  ;;  %v549_v45 = vpack.c.bf16 %v86_v41, %v85_v40  ;;  %v570_v46 = vpack.c.bf16 %v178_v44, %v177_v43  ;;  %v179_v48 = vld [vmem:[#allocation4 + $0x70] sm:$0xff]  ;;  %v180_v49 = vld [vmem:[#allocation4 + $0x78] sm:$0xff]  ;;  %v258_v51 = vld [vmem:[#allocation6] sm:$0xff] }
  0x41   :  { %535 = vmatpush3.bf16.msra.mxu0 %v534_v14  ;;  %v573_v50 = vpack.c.bf16 %v180_v49, %v179_v48  ;;  %v259_v52 = vld [vmem:[#allocation6 + $0x8] sm:$0xff]  ;;  %v260_v53 = vld [vmem:[#allocation6 + $0x10] sm:$0xff]  ;;  %v261_v55 = vld [vmem:[#allocation6 + $0x18] sm:$0xff] }
  0x42   :  { %536 = vmatprep.subr.bf16.mxu0 %v683_v0  ;;  %v576_v54 = vpack.c.bf16 %v259_v52, %v258_v51  ;;  %v579_v56 = vpack.c.bf16 %v261_v55, %v260_v53  ;;  %v262_v57 = vld [vmem:[#allocation6 + $0x20] sm:$0xff]  ;;  %v263_v58 = vld [vmem:[#allocation6 + $0x28] sm:$0xff]  ;;  %v264_v60 = vld [vmem:[#allocation6 + $0x30] sm:$0xff] }
  0x43   :  { %559 = vmatpush3.bf16.msra.mxu1 %v558_v24  ;;  %v582_v59 = vpack.c.bf16 %v263_v58, %v262_v57  ;;  %v265_v61 = vld [vmem:[#allocation6 + $0x38] sm:$0xff]  ;;  %v266_v63 = vld [vmem:[#allocation6 + $0x40] sm:$0xff]  ;;  %v268_v3 = vld [vmem:[#allocation6 + $0x50] sm:$0xff]  ;;  %v686_v24 = vmov 0  }
  0x44   :  { %560 = vmatprep.subr.bf16.mxu1 %v683_v0  ;;  %v585_v62 = vpack.c.bf16 %v265_v61, %v264_v60  ;;  %v269_v4 = vld [vmem:[#allocation6 + $0x58] sm:$0xff]  ;;  %v270_v6 = vld [vmem:[#allocation6 + $0x60] sm:$0xff]  ;;  %v271_v7 = vld [vmem:[#allocation6 + $0x68] sm:$0xff] }
  0x45   :  { %538 = vmatpush3.bf16.msra.mxu0 %v537_v21  ;;  %v591_v5 = vpack.c.bf16 %v269_v4, %v268_v3  ;;  %v594_v8 = vpack.c.bf16 %v271_v7, %v270_v6  ;;  %v368_v9 = vld [vmem:[%s834_s2] ss:$0 sm:$0xff]  ;;  %v273_v15 = vld [vmem:[#allocation6 + $0x78] sm:$0xff] }
  0x46   :  { %539 = vmatprep.subr.bf16.mxu0 %v683_v0  ;;  %v272_v14 = vld [vmem:[#allocation6 + $0x70] sm:$0xff] }
  0x47   :  { %562 = vmatpush3.bf16.msra.mxu1 %v561_v30  ;;  %v597_v16 = vpack.c.bf16 %v273_v15, %v272_v14  ;;  %v369_v17 = vld [vmem:[%s836_s4] ss:$0 sm:$0xff] }
  0x48   :  { %563 = vmatprep.subr.bf16.mxu1 %v683_v0  ;;  %v351_v21 = vld [vmem:[%s839_s7] sm:$0x1] }
  0x49   :  { %541 = vmatpush3.bf16.msra.mxu0 %v540_v27  ;;  %vm352_vm1 = vcmp.ne.f32.partialorder %v351_v21, 0.0  ;;  %v370_v26 = vld [vmem:[%s838_s6] ss:$0 sm:$0xff] }
  0x4a   :  { %542 = vmatprep.subr.bf16.mxu0 %v683_v0  ;;  %v354_v25 = vsel %vm352_vm1, 1, %v686_v24 }
  0x4b   :  { %565 = vmatpush3.bf16.msra.mxu1 %v564_v36  ;;  %v358_v27 = vrot.slane %v354_v25, %v357_v23 }
  0x4c   :  { %566 = vmatprep.subr.bf16.mxu1 %v683_v0 }
  0x4d   :  { %544 = vmatpush3.bf16.msra.mxu0 %v543_v33  ;;  %vm359_vm2 = vcmp.eq.s32.totalorder %v358_v27, 1 }
  0x4e   :  { %545 = vmatprep.subr.bf16.mxu0 %v683_v0 }
  0x4f   :  { %568 = vmatpush3.bf16.msra.mxu1 %v567_v42 }
  0x50   :  { %569 = vmatprep.subr.bf16.mxu1 %v683_v0 }
  0x51   :  { %547 = vmatpush3.bf16.msra.mxu0 %v546_v39 }
  0x52   :  { %548 = vmatprep.subr.bf16.mxu0 %v683_v0 }
  0x53   :  { %571 = vmatpush3.bf16.msra.mxu1 %v570_v46 }
  0x54   :  { %572 = vmatprep.subr.bf16.mxu1 %v683_v0 }
  0x55   :  { %550 = vmatpush3.bf16.msra.mxu0 %v549_v45 }
  0x56   :  { %575 = vmatprep.subr.bf16.mxu0 %v683_v0 }
  0x57   :  { %574 = vmatpush3.bf16.msra.mxu1 %v573_v50 }
  0x58   :  { %455 = vmatmul.mubr.f32.vlgmr.msra.gmra.mrb[0].mxu0 %v70_v47 }
  0x59   :  { %524 = vmatprep.mubr.msk.f32.mxu0 %vm684_vm0, %v685_v1  ;;  %577 = vmatpush3.bf16.msra.mxu0 %v576_v54  ;;  %v267_v1 = vld [vmem:[#allocation6 + $0x48] sm:$0xff] }
  0x5a   :  { %578 = vmatprep.subr.bf16.mxu0 %v683_v0  ;;  %v588_v2 = vpack.c.bf16 %v267_v1, %v266_v63 }
  0x5d   :  { %580 = vmatpush3.bf16.msra.mxu0 %v579_v56 }
  0x5e   :  { %581 = vmatprep.subr.bf16.mxu0 %v683_v0 }
  0x61   :  { %583 = vmatpush3.bf16.msra.mxu0 %v582_v59 }
  0x62   :  { %584 = vmatprep.subr.bf16.mxu0 %v683_v0 }
  0x65   :  { %586 = vmatpush3.bf16.msra.mxu0 %v585_v62 }
  0x66   :  { %587 = vmatprep.subr.bf16.mxu0 %v683_v0 }
  0x69   :  { %589 = vmatpush3.bf16.msra.mxu0 %v588_v2 }
  0x6a   :  { %590 = vmatprep.subr.bf16.mxu0 %v683_v0 }
  0x6d   :  { %592 = vmatpush3.bf16.msra.mxu0 %v591_v5 }
  0x6e   :  { %593 = vmatprep.subr.bf16.mxu0 %v683_v0 }
  0x71   :  { %595 = vmatpush3.bf16.msra.mxu0 %v594_v8 }
  0x72   :  { %596 = vmatprep.subr.bf16.mxu0 %v683_v0 }
  0x75   :  { %598 = vmatpush3.bf16.msra.mxu0 %v597_v16 }
 0x12b   :  { %v160_v10 = vpop.f32.mrb[0].mxu0 }
 0x12c   :  { %v161_v11 = vadd.f32 %v368_v9, %v160_v10  ;;  %v456_v12 = vpop.f32.mrb[1].mxu0 }
 0x12e   :  { %v164_v13 = vmax.f32 %v161_v11, 0.0 }
 0x130   :  { %490 = vmatmul.mubr.f32.vlgmr.msra.gmra.mrb[0].mxu1 %v164_v13 }
 0x203   :  { %v254_v18 = vpop.f32.mrb[0].mxu1 }
 0x204   :  { %v255_v19 = vadd.f32 %v369_v17, %v254_v18  ;;  %v491_v0 = vpop.f32.mrb[1].mxu1 }
 0x206   :  { %525 = vmatmul.mubr.f32.vlgmr.msra.gmra.mrb[2].mxu0 %v255_v19 }
 0x2d9   :  { %v347_v28 = vpop.f32.mrb[2].mxu0 }
 0x2da   :  { %v348_v29 = vadd.f32 %v370_v26, %v347_v28  ;;  %v526_v30 = vpop.f32.mrb[3].mxu0 }
 0x2dc   :  { %v353_v31 = vmax.f32 %v348_v29, 0.0 }
 0x2de   :  { %v360_v32 = vsel %vm359_vm2, %v353_v31, %v348_v29 }
 0x2df   :  { %361 = vst [vmem:[%s840_s8] sm:$0xff] %v360_v32 }
 0x2e0   :  { %366 = vsyncpa [#allocation3], 1 }
 0x2e1   :  { %367 = vsyncpa [#allocation5], 1 }

</bundles_post_ra>
